<compile_context>
chip_gen: v7x
topology: tpu7x:2x2x1
jax: 0.10.0
libtpu: 0.0.40
codegen_flags: <defaults>
</compile_context>

<pallas_src>
import functools

import jax
import jax.numpy as jnp
from jax.experimental import pallas as pl
from jax.experimental.pallas import tpu as pltpu


def _round_up(x, m):
    return (x + m - 1) // m * m


def valuenet_kernel(x_ref, w1_ref, b1_ref, w2_ref, b2_ref, o_ref, *, chunk, n_inner):
    # x_ref:  (tile_b, n_states)    VMEM, streamed per grid step
    # w1_ref: (n_hiddens, n_states) VMEM, resident (constant index_map)
    # b1_ref: (n_hiddens, 1)        VMEM, resident
    # w2_ref: (n_hiddens, 1)        VMEM, resident (fc2 weight as a column)
    # b2_ref: (1,)                  SMEM scalar
    # o_ref:  (n_inner, chunk)      VMEM, one lane-dense row per inner chunk
    w1 = w1_ref[...]
    b1 = b1_ref[...]
    w2 = w2_ref[...]
    b2 = b2_ref[0]

    def body(c, carry):
        r0 = pl.multiple_of(c * chunk, chunk)
        xc = x_ref[pl.ds(r0, chunk), :]                    # (chunk, n_states)
        # fc1 as hT = W1 @ x_chunk^T -> (n_hiddens, chunk): batch on lanes.
        h = jax.lax.dot_general(
            w1, xc,
            dimension_numbers=(((1,), (1,)), ((), ())),    # contract n_states
            preferred_element_type=jnp.float32,
        )
        h = jnp.maximum(h + b1, 0.0)                       # bias + ReLU
        # fc2 (out_features == 1): weighted sublane reduce -> (1, chunk).
        v = jnp.sum(h * w2, axis=0, keepdims=True)
        y = jnp.tanh(v + b2)
        o_ref[pl.ds(c, 1), :] = y.astype(o_ref.dtype)      # lane-dense store
        return carry

    jax.lax.fori_loop(0, n_inner, body, 0)


def value_net_forward(x, w1, b1, w2, b2, *, tile_b=8192, chunk=256):
    """ValueNet forward: tanh(relu(x @ w1.T + b1) @ w2.T + b2).

    x: [B, n_states]; w1: [n_hiddens, n_states]; b1: [n_hiddens];
    w2: [1, n_hiddens]; b2: [1].  Returns [B, 1] in x.dtype.

    For very large batches, feed x in bfloat16 straight from the producer to
    halve the dominant HBM read; the matmul still accumulates in f32 in-kernel
    (do NOT cast in a wrapper -- that is a separate full HBM pass).
    """
    B, n_states = x.shape
    n_hiddens = w1.shape[0]

    # ---- derive tiling -----------------------------------------------------
    # Cap so double-buffered, lane-padded x blocks stay well under VMEM
    # (tile_b * 128 lanes * 4 B * 2 buffers <= 32 MiB at the cap).
    tile_b = min(tile_b, 32768)
    if B <= tile_b:
        # Single grid step, sized to the batch (sublane-aligned). Garbage rows
        # in the padded tail only produce garbage outputs that get sliced away.
        chunk = min(chunk, _round_up(B, 8))
        tile_b = _round_up(B, chunk)
    else:
        # Multi-step grid: keep tile_b a multiple of 8*chunk so the output
        # block's second-minor dim (n_inner) satisfies the (8, 128) rule.
        tile_b = _round_up(tile_b, 8 * chunk)
    n_inner = tile_b // chunk
    num_tiles = pl.cdiv(B, tile_b)

    # ---- parameter layouts (tiny; prepared once; no copy of x) -------------
    w1_m = w1.astype(x.dtype)                              # (n_hiddens, n_states)
    b1_c = b1.reshape(n_hiddens, 1).astype(jnp.float32)    # (n_hiddens, 1)
    w2_c = w2.reshape(n_hiddens, 1).astype(jnp.float32)    # (n_hiddens, 1)
    b2_s = b2.reshape(1).astype(jnp.float32)               # (1,) -> SMEM

    itemsize = x.dtype.itemsize
    cost = pl.CostEstimate(
        flops=2 * B * n_hiddens * (n_states + 1),
        transcendentals=B,
        bytes_accessed=(B * n_states * itemsize                    # read x
                        + num_tiles * tile_b * itemsize            # write out
                        + (n_states + 2) * n_hiddens * 4 + 4),     # params once
    )

    # Scoped-VMEM budget: double-buffered, lane-padded x blocks dominate.
    lane_w = _round_up(n_states, 128)
    vmem_limit = int(min(128 << 20, max(32 << 20, 3 * tile_b * lane_w * itemsize)))

    out = pl.pallas_call(
        functools.partial(valuenet_kernel, chunk=chunk, n_inner=n_inner),
        out_shape=jax.ShapeDtypeStruct((num_tiles * n_inner, chunk), x.dtype),
        grid_spec=pltpu.PrefetchScalarGridSpec(
            num_scalar_prefetch=0,
            grid=(num_tiles,),
            in_specs=[
                pl.BlockSpec((tile_b, n_states), lambda i: (i, 0)),     # x tile
                pl.BlockSpec((n_hiddens, n_states), lambda i: (0, 0)),  # W1
                pl.BlockSpec((n_hiddens, 1), lambda i: (0, 0)),         # b1 col
                pl.BlockSpec((n_hiddens, 1), lambda i: (0, 0)),         # w2 col
                pl.BlockSpec(memory_space=pltpu.MemorySpace.SMEM),      # b2
            ],
            out_specs=pl.BlockSpec((n_inner, chunk), lambda i: (i, 0)),
        ),
        compiler_params=pltpu.CompilerParams(
            dimension_semantics=("parallel",),    # megacore split on v7x
            vmem_limit_bytes=vmem_limit,
        ),
        cost_estimate=cost,
    )(x, w1_m, b1_c, w2_c, b2_s)

    # (num_tiles * n_inner, chunk): row-major flatten is exactly batch order.
    return out.reshape(-1)[:B].reshape(B, 1)


def value_net_reference(x, w1, b1, w2, b2):
    hi = jax.lax.Precision.HIGHEST
    h = jnp.maximum(jnp.dot(x, w1.T, precision=hi) + b1, 0.0)
    return jnp.tanh(jnp.dot(h, w2.T, precision=hi) + b2)


if __name__ == "__main__":
    key = jax.random.PRNGKey(0)
    n_states, n_hiddens = 16, 32
    kx, k1, k2, k3, k4 = jax.random.split(key, 5)

    # nn.Linear-style init: U(-1/sqrt(fan_in), 1/sqrt(fan_in)).
    bound1 = 1.0 / jnp.sqrt(jnp.float32(n_states))
    w1 = jax.random.uniform(k1, (n_hiddens, n_states), jnp.float32, -bound1, bound1)
    b1 = jax.random.uniform(k2, (n_hiddens,), jnp.float32, -bound1, bound1)
    bound2 = 1.0 / jnp.sqrt(jnp.float32(n_hiddens))
    w2 = jax.random.uniform(k3, (1, n_hiddens), jnp.float32, -bound2, bound2)
    b2 = jax.random.uniform(k4, (1,), jnp.float32, -bound2, bound2)

    # Small batch: single tile, single chunk.
    B = 8
    x = jax.random.normal(kx, (B, n_states), dtype=jnp.float32)
    out = jax.block_until_ready(value_net_forward(x, w1, b1, w2, b2))
    ref = value_net_reference(x, w1, b1, w2, b2)
    assert out.shape == (B, 1)
    assert jnp.allclose(out, ref, atol=1e-5, rtol=1e-5), "mismatch vs reference (B=8)"

    # Ragged single-tile batch: partial block, non-power-of-2 chunk.
    B2 = 300
    x2 = jax.random.normal(kx, (B2, n_states), dtype=jnp.float32)
    out2 = jax.block_until_ready(value_net_forward(x2, w1, b1, w2, b2))
    ref2 = value_net_reference(x2, w1, b1, w2, b2)
    assert out2.shape == (B2, 1)
    assert jnp.allclose(out2, ref2, atol=1e-5, rtol=1e-5), "mismatch vs reference (B=300)"

    # Multi-tile grid + in-kernel chunk loop + ragged last tile.
    B3 = 10000
    x3 = jax.random.normal(kx, (B3, n_states), dtype=jnp.float32)
    out3 = jax.block_until_ready(value_net_forward(x3, w1, b1, w2, b2, tile_b=4096))
    ref3 = value_net_reference(x3, w1, b1, w2, b2)
    assert out3.shape == (B3, 1)
    assert jnp.allclose(out3, ref3, atol=1e-5, rtol=1e-5), "mismatch vs reference (B=10000)"

    print("KERNEL_OK")
</pallas_src>

<mosaic_0001>
module attributes {stable_mosaic.version = 11 : i64} {
  func.func @valuenet_kernel(%arg0: i32, %arg1: memref<8x16xf32, #tpu.memory_space<vmem>>, %arg2: memref<32x16xf32, #tpu.memory_space<vmem>>, %arg3: memref<32x1xf32, #tpu.memory_space<vmem>>, %arg4: memref<32x1xf32, #tpu.memory_space<vmem>>, %arg5: memref<1xf32, #tpu.memory_space<smem>>, %arg6: memref<1x8xf32, #tpu.memory_space<vmem>>) attributes {dimension_semantics = [#tpu.dimension_semantics<parallel>], iteration_bounds = array<i64: 1>, scalar_prefetch = 0 : i64, scratch_operands = 0 : i64, tpu.core_type = #tpu.core_type<tc>, window_params = [{transform_indices = @transform_0, window_bounds = array<i64: 8, 16>}, {pipeline_mode = #tpu.pipeline_mode<synchronous>, transform_indices = @transform_1, window_bounds = array<i64: 32, 16>}, {pipeline_mode = #tpu.pipeline_mode<synchronous>, transform_indices = @transform_2, window_bounds = array<i64: 32, 1>}, {pipeline_mode = #tpu.pipeline_mode<synchronous>, transform_indices = @transform_3, window_bounds = array<i64: 32, 1>}, {transform_indices = @transform_4, window_bounds = array<i64: 1>}, {transform_indices = @transform_5, window_bounds = array<i64: 1, 8>}]} {
    %c0 = arith.constant 0 : index
    %c0_0 = arith.constant 0 : index
    %0 = vector.load %arg2[%c0, %c0_0] : memref<32x16xf32, #tpu.memory_space<vmem>>, vector<32x16xf32>
    %c0_1 = arith.constant 0 : index
    %c0_2 = arith.constant 0 : index
    %1 = vector.load %arg3[%c0_1, %c0_2] : memref<32x1xf32, #tpu.memory_space<vmem>>, vector<32x1xf32>
    %c0_3 = arith.constant 0 : index
    %c0_4 = arith.constant 0 : index
    %2 = vector.load %arg4[%c0_3, %c0_4] : memref<32x1xf32, #tpu.memory_space<vmem>>, vector<32x1xf32>
    %c0_5 = arith.constant 0 : index
    %3 = memref.load %arg5[%c0_5] : memref<1xf32, #tpu.memory_space<smem>>
    %c0_i32 = arith.constant 0 : i32
    %c8_i32 = arith.constant 8 : i32
    %4 = arith.muli %c0_i32, %c8_i32 : i32
    %5 = tpu.assume_multiple %4, 8 : i32
    %6 = arith.index_cast %5 : i32 to index
    %c0_6 = arith.constant 0 : index
    %7 = vector.load %arg1[%6, %c0_6] : memref<8x16xf32, #tpu.memory_space<vmem>>, vector<8x16xf32>
    %cst = arith.constant dense<0.000000e+00> : vector<32x8xf32>
    %8 = tpu.matmul %0, %7, %cst {dimension_numbers = #tpu.dot_dimension_numbers<[1], [1], [0], [0], [0, 0, 1, 0], [], []>} : vector<32x16xf32>, vector<8x16xf32>, vector<32x8xf32> -> vector<32x8xf32>
    %9 = vector.broadcast %1 : vector<32x1xf32> to vector<32x8xf32>
    %10 = arith.addf %8, %9 : vector<32x8xf32>
    %cst_7 = arith.constant 0.000000e+00 : f32
    %11 = vector.broadcast %cst_7 : f32 to vector<32x8xf32>
    %12 = arith.maximumf %10, %11 : vector<32x8xf32>
    %13 = vector.broadcast %2 : vector<32x1xf32> to vector<32x8xf32>
    %14 = arith.mulf %12, %13 : vector<32x8xf32>
    %cst_8 = arith.constant dense<0.000000e+00> : vector<8xf32>
    %15 = vector.multi_reduction <add>, %14, %cst_8 [0] : vector<32x8xf32> to vector<8xf32>
    %16 = vector.shape_cast %15 : vector<8xf32> to vector<1x8xf32>
    %17 = vector.broadcast %3 : f32 to vector<1x8xf32>
    %18 = arith.addf %16, %17 : vector<1x8xf32>
    %19 = math.tanh %18 : vector<1x8xf32>
    %20 = arith.index_cast %c0_i32 : i32 to index
    %c0_9 = arith.constant 0 : index
    %21 = vector.load %arg6[%20, %c0_9] : memref<1x8xf32, #tpu.memory_space<vmem>>, vector<1x8xf32>
    tpu.vector_store %arg6[%20, %c0_9], %19 {strides = array<i32>} : memref<1x8xf32, #tpu.memory_space<vmem>>, vector<1x8xf32>,
    %c1_i32 = arith.constant 1 : i32
    return
  }
  func.func @transform_0(%arg0: i32) -> (i32, i32) {
    %c0_i32 = arith.constant 0 : i32
    %c0_i32_0 = arith.constant 0 : i32
    return %arg0, %c0_i32 : i32, i32
  }
  func.func @transform_1(%arg0: i32) -> (i32, i32) {
    %c0_i32 = arith.constant 0 : i32
    %c0_i32_0 = arith.constant 0 : i32
    %c0_i32_1 = arith.constant 0 : i32
    return %c0_i32, %c0_i32_0 : i32, i32
  }
  func.func @transform_2(%arg0: i32) -> (i32, i32) {
    %c0_i32 = arith.constant 0 : i32
    %c0_i32_0 = arith.constant 0 : i32
    %c0_i32_1 = arith.constant 0 : i32
    return %c0_i32, %c0_i32_0 : i32, i32
  }
  func.func @transform_3(%arg0: i32) -> (i32, i32) {
    %c0_i32 = arith.constant 0 : i32
    %c0_i32_0 = arith.constant 0 : i32
    %c0_i32_1 = arith.constant 0 : i32
    return %c0_i32, %c0_i32_0 : i32, i32
  }
  func.func @transform_4(%arg0: i32) -> i32 {
    %c0_i32 = arith.constant 0 : i32
    %c0_i32_0 = arith.constant 0 : i32
    return %c0_i32 : i32
  }
  func.func @transform_5(%arg0: i32) -> (i32, i32) {
    %c0_i32 = arith.constant 0 : i32
    %c0_i32_0 = arith.constant 0 : i32
    return %arg0, %c0_i32 : i32, i32
  }
}

</mosaic_0001>

<bundles_post_ra>
// kernel: tpu_custom_call.1
= control target key start
LH: loop header
LB: loop body
LE: loop exit
PB: predicated region body
PF: predicated region fallthrough
CT: control target
= control target key end

     0   :  { %vm56_vm0 = vcmask 130048   ;;  %v268_v7 = vmov 0   ;;  %s362_s0 = inlined_call_operand.vmem [shape: f32[8,16], index: 0, kind: input, shape index: {}]   ;;  %s363_s1 = inlined_call_operand.vmem [shape: f32[32,16], index: 1, kind: input, shape index: {}]   ;;  %s364_s2 = inlined_call_operand.vmem [shape: f32[32,1], index: 2, kind: input, shape index: {}]   ;;  %s365_s3 = inlined_call_operand.vmem [shape: f32[32,1], index: 3, kind: input, shape index: {}]   ;;  %s366_s4 = inlined_call_operand.<no memory space> [shape: f32[1], index: 4, kind: input, shape index: {}]   ;;  %s367_s5 = inlined_call_operand.hbm [shape: f32[1,8], index: 5, kind: output, shape index: {}]  }
   0x1   :  { %v35_v0 = vld [vmem:[%s362_s0] sm:$0xff]  ;;  %v24_v2 = vld [vmem:[%s363_s1 + $0x10] sm:$0xff]  ;;  %v23_v3 = vld [vmem:[%s363_s1 + $0x8] sm:$0xff]  ;;  %240 = vset.pattern.permute.xlu0 %v268_v7  ;;  %241 = vset.pattern.permute.xlu1 %v268_v7 }
   0x2   :  { %v22_v1 = vld [vmem:[%s363_s1] sm:$0xff]  ;;  %228 = vmatprep.subr.msk.mxu0 %vm56_vm0, %v35_v0  ;;  %236 = vmatprep.subr.msk.mxu1 %vm56_vm0, %v35_v0  ;;  %v25_v4 = vld [vmem:[%s363_s1 + $0x18] sm:$0xff]  ;;  %v28_v6 = vld [vmem:[%s364_s2 + $0x10] sm:$0xff] }
   0x3   :  { %229 = vmatpush3.xpose.msk.msra.mxu0 %vm56_vm0, %v35_v0  ;;  %237 = vmatpush3.xpose.msk.msra.mxu1 %vm56_vm0, %v35_v0  ;;  %v26_v5 = vld [vmem:[%s364_s2] sm:$0xff] }
   0x4   :  { %230 = vmatprep.mubr.msk.f32.mxu0 %vm56_vm0, %v22_v1  ;;  %233 = vmatprep.mubr.msk.f32.mxu1 %vm56_vm0, %v24_v2 }
   0x5   :  { %11 = vsyncpa [#allocation4], 0  ;;  %38 = vperm.xlu0 %240, %v26_v5   ;;  %48 = vperm.xlu1 %241, %v28_v6   ;;  %v27_v8 = vld [vmem:[%s364_s2 + $0x8] sm:$0xff]  ;;  %v29_v9 = vld [vmem:[%s364_s2 + $0x18] sm:$0xff]  ;;  %vm185_vm1 = vcmask 64512   ;;  %v199_v50 = vstv %s366_s4  ;;  %s269_s17 = smov [#allocation3]  }
   0x6   :  { %231 = vmatmul.mubr.msk.f32.vlgmr.msra.gmra.mrb[0].mxu0 %vm56_vm0, %v23_v3  ;;  %234 = vmatmul.mubr.msk.f32.vlgmr.msra.gmra.mrb[0].mxu1 %vm56_vm0, %v25_v4  ;;  %v30_v10 = vld [vmem:[%s365_s3] sm:$0xff]  ;;  %v31_v11 = vld [vmem:[%s365_s3 + $0x8] sm:$0xff]  ;;  %v32_v12 = vld [vmem:[%s365_s3 + $0x10] sm:$0xff]  ;;  %s210_s18 = sshll.u32 %s269_s17, 4  ;;  %vm202_vm2 = vcmask 57344   ;;  %s211_s18 = int_to_ptr.vmem [resolvable:$true] %s210_s18 }
   0x7   :  { %v33_v13 = vld [vmem:[%s365_s3 + $0x18] sm:$0xff]  ;;  %s244_s19 = scalar_lea.vmem %s211_s18, 16  ;;  %s248_s20 = scalar_lea.vmem %s211_s18, 32 }
   0x8   :  { %p245_p0 = scmp.ne.s32.totalorder %s211_s18, %s244_s19  ;;  %p249_p1 = scmp.lt.s32.totalorder %s211_s18, %s211_s18 }
   0x9   :  { %43 = vperm.xlu0 %240, %v27_v8   ;;  %53 = vperm.xlu1 %241, %v29_v9   ;;  %p250_p2 = scmp.lt.s32.totalorder %s248_s20, %s244_s19 }
   0xb   :  { %p251_p3 = por %p250_p2, %p249_p1 }
   0xd   :  { %163 = vperm.xlu0 %240, %v30_v10   ;;  %168 = vperm.xlu1 %241, %v31_v11   ;;  %p252_p4 = pnand %p251_p3, %p245_p0 }
  0x11   :  { %173 = vperm.xlu0 %240, %v32_v12   ;;  %178 = vperm.xlu1 %241, %v33_v13  }
  0x84   :  { %v39_v14 = vpop.permute.xlu0 %38  ;;  %v49_v15 = vpop.permute.xlu1 %48 }
  0x88   :  { %v44_v16 = vpop.permute.xlu0 %43  ;;  %v54_v17 = vpop.permute.xlu1 %53 }
  0x8c   :  { %v164_v18 = vpop.permute.xlu0 %163  ;;  %v169_v19 = vpop.permute.xlu1 %168 }
  0x90   :  { %v174_v32 = vpop.permute.xlu0 %173  ;;  %v179_v36 = vpop.permute.xlu1 %178 }
  0xd9   :  { %v232_v20 = vpop.f32.mrb[0].mxu0  ;;  %v235_v21 = vpop.f32.mrb[0].mxu1 }
  0xda   :  { %v144_v22 = vadd.f32 %v232_v20, %v44_v16  ;;  %v154_v23 = vadd.f32 %v235_v21, %v54_v17  ;;  %v138_v24 = vpop.f32.mrb[1].mxu0  ;;  %v148_v25 = vpop.f32.mrb[1].mxu1 }
  0xdb   :  { %v139_v26 = vadd.f32 %v138_v24, %v39_v14  ;;  %v149_v27 = vadd.f32 %v148_v25, %v49_v15 }
  0xdc   :  { %v158_v28 = vmax.f32 %v144_v22, 0.0  ;;  %v160_v29 = vmax.f32 %v154_v23, 0.0 }
  0xdd   :  { %v157_v30 = vmax.f32 %v139_v26, 0.0  ;;  %v159_v31 = vmax.f32 %v149_v27, 0.0 }
  0xde   :  { %v182_v33 = vmul.f32 %v169_v19, %v158_v28  ;;  %v184_v38 = vmul.f32 %v179_v36, %v160_v29 }
  0xdf   :  { %v181_v34 = vmul.f32 %v164_v18, %v157_v30  ;;  %v183_v35 = vmul.f32 %v174_v32, %v159_v31 }
  0xe0   :  { %v187_v37 = vsel %vm185_vm1, %v182_v33, 0.0  ;;  %v191_v43 = vsel %vm185_vm1, %v184_v38, 0.0 }
  0xe1   :  { %v186_v39 = vsel %vm185_vm1, %v181_v34, 0.0  ;;  %v189_v41 = vsel %vm185_vm1, %v183_v35, 0.0 }
  0xe2   :  { %v188_v40 = vadd.f32 %v187_v37, %v186_v39 }
  0xe4   :  { %v190_v42 = vadd.f32 %v189_v41, %v188_v40 }
  0xe6   :  { %v192_v44 = vadd.f32 %v191_v43, %v190_v42 }
  0xe8   :  { %v193_v45 = vrot.slane %v192_v44, 4 }
  0xea   :  { %v194_v46 = vadd.f32 %v193_v45, %v192_v44 }
  0xec   :  { %v195_v47 = vrot.slane %v194_v46, 2 }
  0xee   :  { %v196_v48 = vadd.f32 %v195_v47, %v194_v46 }
  0xf0   :  { %v197_v49 = vrot.slane %v196_v48, 1 }
  0xf2   :  { %v198_v51 = vadd.f32 %v197_v49, %v196_v48 }
  0xf4   :  { %v200_v52 = vadd.f32 %v199_v50, %v198_v51 }
  0xf6   :  { %242 = vtanh.f32 %v200_v52 }
 0x100   :  { %v243_v53 = vpop.eup %242 }
 0x101   :  { %203 = vst.msk [vmem:[#allocation3] sm:$0x1] %vm202_vm2, %v243_v53 }
 0x102   :  { %255 = shalt.err (!%p252_p4)
}
 0x103   :  { %s256_s4 = scalar_lea.hbm %s367_s5, 16 }
 0x104   :  { %p257_p5 = scmp.ne.s32.totalorder %s367_s5, %s256_s4  ;;  %p260_p6 = scmp.lt.u32.totalorder %s256_s4, %s367_s5 }
 0x106   :  { %p262_p7 = pnand %p260_p6, %p257_p5 }
 0x108   :  { %265 = shalt.err (!%p262_p7)
}
 0x109   :  { %213 = dma.vmem_to_hbm [thread:$0]  %s211_s18, 16, %s367_s5, [#allocation4]  }
 0x10a   :  { %266 = dma.done.wait [#allocation4], 16  }
 0x10b   :  { %267 = vsyncadd [#allocation4], 4294967280 }
 0x10c   :  { %217 = vsyncpa [#allocation4], 1 }

</bundles_post_ra>
